<compile_context>
chip_gen: v7x
topology: tpu7x:2x2x1
jax: 0.10.0
libtpu: 0.0.40
codegen_flags: <defaults>
</compile_context>

<pallas_src>
import functools

import jax
import jax.numpy as jnp
from jax.experimental import pallas as pl
from jax.experimental.pallas import tpu as pltpu


# ----------------------------------------------------------------------------
# Pallas kernel: fused  (A_hat @ X) @ W + b   with K-accumulation in VMEM
# ----------------------------------------------------------------------------
def _gcn_kernel(a_ref, x_ref, w_ref, b_ref, o_ref, acc_ref, *, compute_dtype):
    k = pl.program_id(1)

    @pl.when(k == 0)
    def _():
        acc_ref[...] = jnp.zeros_like(acc_ref)

    # Partial aggregate: A_hat[i, k-tile] @ X[k-tile, :]  (MXU, f32 accumulate)
    acc_ref[...] += jnp.dot(
        a_ref[...].astype(compute_dtype),
        x_ref[...].astype(compute_dtype),
        preferred_element_type=jnp.float32,
    )

    # Final K step: project through the resident weight (f32), add bias, store.
    @pl.when(k == pl.num_programs(1) - 1)
    def _():
        out = jnp.dot(
            acc_ref[...],
            w_ref[...],
            preferred_element_type=jnp.float32,
        )
        o_ref[...] = (out + b_ref[...]).astype(o_ref.dtype)


def _round_up(v, m):
    return ((v + m - 1) // m) * m


def gcn_layer_pallas(a_hat, x, w_t, b, *,
                     compute_dtype=jnp.bfloat16, tm=256, tk=512):
    """a_hat: [N, N], x: [N, F], w_t: [F, H] (torch weight.T), b: [H]."""
    n, f = x.shape
    h = w_t.shape[1]

    # Tile sizes: sublane multiple of 8, lane multiple of 128, clamped to the
    # (padded) problem.  Defaults (256, 512) keep the double-buffered pipeline
    # well under the scoped-VMEM defaults of v5e (16 MiB) / v7x (32 MiB).
    tm = min(tm, _round_up(n, 8))
    tk = min(tk, _round_up(n, 128))

    n_row = _round_up(n, tm)        # rows of A_hat / output
    n_col = _round_up(n, tk)        # contraction dim (cols of A_hat, rows of X)
    f_pad = _round_up(f, 128)       # lane-dense feature dim
    h_pad = _round_up(h, 128)       # lane-dense output dim

    # Zero-pad once in the wrapper (fused by XLA).  A_hat / X are bf16 (the
    # dominant HBM streams); W / b stay f32 (tiny, resident in VMEM).
    a_p = jnp.zeros((n_row, n_col), compute_dtype).at[:n, :n].set(
        a_hat.astype(compute_dtype))
    x_p = jnp.zeros((n_col, f_pad), compute_dtype).at[:n, :f].set(
        x.astype(compute_dtype))
    w_p = jnp.zeros((f_pad, h_pad), jnp.float32).at[:f, :h].set(
        w_t.astype(jnp.float32))
    b_p = jnp.zeros((1, h_pad), jnp.float32).at[0, :h].set(
        b.astype(jnp.float32))

    grid = (n_row // tm, n_col // tk)
    itemsize = jnp.dtype(compute_dtype).itemsize
    cost = pl.CostEstimate(
        flops=2 * n_row * n_col * f_pad + 2 * n_row * f_pad * h_pad,
        transcendentals=0,
        bytes_accessed=(a_p.size + grid[0] * x_p.size) * itemsize
                       + (w_p.size + b_p.size + n_row * h_pad) * 4,
    )

    kernel = functools.partial(_gcn_kernel, compute_dtype=compute_dtype)

    out = pl.pallas_call(
        kernel,
        out_shape=jax.ShapeDtypeStruct((n_row, h_pad), jnp.float32),
        grid_spec=pltpu.PrefetchScalarGridSpec(
            num_scalar_prefetch=0,
            grid=grid,
            in_specs=[
                pl.BlockSpec((tm, tk), lambda i, k: (i, k)),       # A_hat tile
                pl.BlockSpec((tk, f_pad), lambda i, k: (k, 0)),    # X tile
                pl.BlockSpec((f_pad, h_pad), lambda i, k: (0, 0)), # W (resident)
                pl.BlockSpec((1, h_pad), lambda i, k: (0, 0)),     # b (resident)
            ],
            out_specs=pl.BlockSpec((tm, h_pad), lambda i, k: (i, 0)),
            scratch_shapes=[pltpu.VMEM((tm, f_pad), jnp.float32)],
        ),
        compiler_params=pltpu.CompilerParams(
            dimension_semantics=("parallel", "arbitrary"),
            vmem_limit_bytes=32 * 1024 * 1024,
        ),
        cost_estimate=cost,
    )(a_p, x_p, w_p, b_p)

    return out[:n, :h]


# Single compiled executable shared by both adjacency branches (same shapes).
_gcn_forward = jax.jit(gcn_layer_pallas,
                       static_argnames=("compute_dtype", "tm", "tk"))


# ----------------------------------------------------------------------------
# Parameter / A_hat setup (plain JAX glue, mirrors the module __init__)
# ----------------------------------------------------------------------------
def build_a_hat(adj):
    """A_hat_norm = D_inv @ (A + I) @ D_inv, D = diag(column-sums of A + I).

    Elementwise scaling instead of dense diag matmuls: O(N^2) not O(N^3).
    """
    adj = adj.astype(jnp.float32)
    n = adj.shape[0]
    a_hat = adj + jnp.eye(n, dtype=jnp.float32)
    d_inv = 1.0 / jnp.sum(a_hat, axis=0)            # column sums, as in torch
    return a_hat * d_inv[:, None] * d_inv[None, :]


class GCNLayerPallas:
    def __init__(self, first_adj, second_adj, input_shape, hidden_states, key):
        self.a_hat_x = build_a_hat(first_adj)
        self.a_hat_y = build_a_hat(second_adj)
        kw, kb = jax.random.split(key)
        # nn.Linear(input_shape, hidden_states): weight [H, F], bias [H].
        bound = 1.0 / (input_shape ** 0.5)
        w = jax.random.uniform(kw, (hidden_states, input_shape),
                               minval=-bound, maxval=bound, dtype=jnp.float32)
        self.w_t = w.T                              # [F, H] for the kernel
        self.b = jax.random.uniform(kb, (hidden_states,),
                                    minval=-bound, maxval=bound,
                                    dtype=jnp.float32)

    def __call__(self, i, input_features):
        a_hat = self.a_hat_x if i == 'x' else self.a_hat_y
        return _gcn_forward(a_hat, input_features, self.w_t, self.b)


# ----------------------------------------------------------------------------
if __name__ == "__main__":
    key = jax.random.PRNGKey(0)
    k_adj1, k_adj2, k_x, k_params = jax.random.split(key, 4)

    N = 8            # number of graph nodes
    F_IN = 16        # input feature dim
    H = 32           # hidden_states

    # Symmetric 0/1 adjacency matrices (LongTensor in torch -> int here).
    a1 = (jax.random.uniform(k_adj1, (N, N)) > 0.5).astype(jnp.int32)
    a1 = jnp.maximum(a1, a1.T)
    a2 = (jax.random.uniform(k_adj2, (N, N)) > 0.5).astype(jnp.int32)
    a2 = jnp.maximum(a2, a2.T)

    x = jax.random.normal(k_x, (N, F_IN), dtype=jnp.float32)

    layer = GCNLayerPallas(a1, a2, F_IN, H, k_params)

    out_x = layer('x', x)
    out_y = layer('y', x)
    jax.block_until_ready(out_x)
    jax.block_until_ready(out_y)

    # Reference check against plain JAX (f32).  Tolerance is loosened because
    # the kernel feeds bf16 A_hat / X to the MXU (f32 accumulation).
    ref_x = (layer.a_hat_x @ x) @ layer.w_t + layer.b
    ref_y = (layer.a_hat_y @ x) @ layer.w_t + layer.b
    assert out_x.shape == (N, H) and out_y.shape == (N, H)
    assert jnp.allclose(out_x, ref_x, rtol=2e-2, atol=2e-2), "mismatch on branch 'x'"
    assert jnp.allclose(out_y, ref_y, rtol=2e-2, atol=2e-2), "mismatch on branch 'y'"

    print("KERNEL_OK")
</pallas_src>

<mosaic_0001>
module attributes {stable_mosaic.version = 11 : i64} {
  func.func @_gcn_kernel(%arg0: i32, %arg1: i32, %arg2: memref<8x128xbf16, #tpu.memory_space<vmem>>, %arg3: memref<128x128xbf16, #tpu.memory_space<vmem>>, %arg4: memref<128x128xf32, #tpu.memory_space<vmem>>, %arg5: memref<1x128xf32, #tpu.memory_space<vmem>>, %arg6: memref<8x128xf32, #tpu.memory_space<vmem>>, %arg7: memref<8x128xf32, #tpu.memory_space<vmem>>) attributes {dimension_semantics = [#tpu.dimension_semantics<parallel>, #tpu.dimension_semantics<arbitrary>], iteration_bounds = array<i64: 1, 1>, scalar_prefetch = 0 : i64, scratch_operands = 1 : i64, tpu.core_type = #tpu.core_type<tc>, window_params = [{transform_indices = @transform_0, window_bounds = array<i64: 8, 128>}, {transform_indices = @transform_1, window_bounds = array<i64: 128, 128>}, {pipeline_mode = #tpu.pipeline_mode<synchronous>, transform_indices = @transform_2, window_bounds = array<i64: 128, 128>}, {pipeline_mode = #tpu.pipeline_mode<synchronous>, transform_indices = @transform_3, window_bounds = array<i64: 1, 128>}, {transform_indices = @transform_4, window_bounds = array<i64: 8, 128>}]} {
    %c0_i32 = arith.constant 0 : i32
    %0 = arith.cmpi eq, %arg1, %c0_i32 : i32
    %1 = arith.extui %0 : i1 to i32
    %c0_i32_0 = arith.constant 0 : i32
    %2 = arith.cmpi ne, %1, %c0_i32_0 : i32
    scf.if %2 {
      %cst_10 = arith.constant 0.000000e+00 : f32
      %12 = vector.broadcast %cst_10 : f32 to vector<8x128xf32>
      %c0_11 = arith.constant 0 : index
      %c0_12 = arith.constant 0 : index
      %13 = vector.load %arg7[%c0_11, %c0_12] : memref<8x128xf32, #tpu.memory_space<vmem>>, vector<8x128xf32>
      tpu.vector_store %arg7[%c0_11, %c0_12], %12 {strides = array<i32>} : memref<8x128xf32, #tpu.memory_space<vmem>>, vector<8x128xf32>,
    } else {
    }
    %c0 = arith.constant 0 : index
    %c0_1 = arith.constant 0 : index
    %3 = vector.load %arg7[%c0, %c0_1] : memref<8x128xf32, #tpu.memory_space<vmem>>, vector<8x128xf32>
    %c0_2 = arith.constant 0 : index
    %c0_3 = arith.constant 0 : index
    %4 = vector.load %arg2[%c0_2, %c0_3] : memref<8x128xbf16, #tpu.memory_space<vmem>>, vector<8x128xbf16>
    %c0_4 = arith.constant 0 : index
    %c0_5 = arith.constant 0 : index
    %5 = vector.load %arg3[%c0_4, %c0_5] : memref<128x128xbf16, #tpu.memory_space<vmem>>, vector<128x128xbf16>
    %cst = arith.constant dense<0.000000e+00> : vector<8x128xf32>
    %6 = tpu.matmul %4, %5, %cst {dimension_numbers = #tpu.dot_dimension_numbers<[1], [0], [0], [1], [0, 0, 1, 1], [], []>} : vector<8x128xbf16>, vector<128x128xbf16>, vector<8x128xf32> -> vector<8x128xf32>
    %7 = arith.addf %3, %6 : vector<8x128xf32>
    %c0_6 = arith.constant 0 : index
    %c0_7 = arith.constant 0 : index
    %8 = vector.load %arg7[%c0_6, %c0_7] : memref<8x128xf32, #tpu.memory_space<vmem>>, vector<8x128xf32>
    tpu.vector_store %arg7[%c0_6, %c0_7], %7 {strides = array<i32>} : memref<8x128xf32, #tpu.memory_space<vmem>>, vector<8x128xf32>,
    %c0_i32_8 = arith.constant 0 : i32
    %9 = arith.cmpi eq, %arg1, %c0_i32_8 : i32
    %10 = arith.extui %9 : i1 to i32
    %c0_i32_9 = arith.constant 0 : i32
    %11 = arith.cmpi ne, %10, %c0_i32_9 : i32
    scf.if %11 {
      %c0_10 = arith.constant 0 : index
      %c0_11 = arith.constant 0 : index
      %12 = vector.load %arg7[%c0_10, %c0_11] : memref<8x128xf32, #tpu.memory_space<vmem>>, vector<8x128xf32>
      %c0_12 = arith.constant 0 : index
      %c0_13 = arith.constant 0 : index
      %13 = vector.load %arg4[%c0_12, %c0_13] : memref<128x128xf32, #tpu.memory_space<vmem>>, vector<128x128xf32>
      %cst_14 = arith.constant dense<0.000000e+00> : vector<8x128xf32>
      %14 = tpu.matmul %12, %13, %cst_14 {dimension_numbers = #tpu.dot_dimension_numbers<[1], [0], [0], [1], [0, 0, 1, 1], [], []>} : vector<8x128xf32>, vector<128x128xf32>, vector<8x128xf32> -> vector<8x128xf32>
      %c0_15 = arith.constant 0 : index
      %c0_16 = arith.constant 0 : index
      %15 = vector.load %arg5[%c0_15, %c0_16] : memref<1x128xf32, #tpu.memory_space<vmem>>, vector<1x128xf32>
      %16 = vector.broadcast %15 : vector<1x128xf32> to vector<8x128xf32>
      %17 = arith.addf %14, %16 : vector<8x128xf32>
      %c0_17 = arith.constant 0 : index
      %c0_18 = arith.constant 0 : index
      %18 = vector.load %arg6[%c0_17, %c0_18] : memref<8x128xf32, #tpu.memory_space<vmem>>, vector<8x128xf32>
      tpu.vector_store %arg6[%c0_17, %c0_18], %17 {strides = array<i32>} : memref<8x128xf32, #tpu.memory_space<vmem>>, vector<8x128xf32>,
    } else {
    }
    return
  }
  func.func @transform_0(%arg0: i32, %arg1: i32) -> (i32, i32) {
    %c0_i32 = arith.constant 0 : i32
    return %arg0, %arg1 : i32, i32
  }
  func.func @transform_1(%arg0: i32, %arg1: i32) -> (i32, i32) {
    %c0_i32 = arith.constant 0 : i32
    %c0_i32_0 = arith.constant 0 : i32
    return %arg1, %c0_i32 : i32, i32
  }
  func.func @transform_2(%arg0: i32, %arg1: i32) -> (i32, i32) {
    %c0_i32 = arith.constant 0 : i32
    %c0_i32_0 = arith.constant 0 : i32
    %c0_i32_1 = arith.constant 0 : i32
    return %c0_i32, %c0_i32_0 : i32, i32
  }
  func.func @transform_3(%arg0: i32, %arg1: i32) -> (i32, i32) {
    %c0_i32 = arith.constant 0 : i32
    %c0_i32_0 = arith.constant 0 : i32
    %c0_i32_1 = arith.constant 0 : i32
    return %c0_i32, %c0_i32_0 : i32, i32
  }
  func.func @transform_4(%arg0: i32, %arg1: i32) -> (i32, i32) {
    %c0_i32 = arith.constant 0 : i32
    %c0_i32_0 = arith.constant 0 : i32
    return %arg0, %c0_i32 : i32, i32
  }
}

</mosaic_0001>

<bundles_post_ra>
// kernel: gcn_layer_pallas.1
= control target key start
LH: loop header
LB: loop body
LE: loop exit
PB: predicated region body
PF: predicated region fallthrough
CT: control target
= control target key end

     0   :  { %v394_v1 = vmov 0.0   ;;  %vm395_vm0 = vmmov 0   ;;  %v396_v3 = vmov 0.0|0.0   ;;  %s513_s0 = inlined_call_operand.vmem [shape: bf16[8,128], index: 0, kind: input, shape index: {}]   ;;  %s514_s1 = inlined_call_operand.vmem [shape: bf16[128,128], index: 1, kind: input, shape index: {}]   ;;  %s515_s2 = inlined_call_operand.vmem [shape: f32[128,128], index: 2, kind: input, shape index: {}]   ;;  %s516_s3 = inlined_call_operand.vmem [shape: f32[1,128], index: 3, kind: input, shape index: {}]   ;;  %s517_s4 = inlined_call_operand.hbm [shape: f32[8,128], index: 4, kind: output, shape index: {}]  }
   0x1   :  { %v362_v0 = vld [vmem:[%s514_s1] sm:$0xff]   ;;  %279 = vmatprep.subr.bf16.mxu0 %v394_v1  ;;  %v363_v2 = vld [vmem:[%s514_s1 + $0x8] sm:$0xff]   ;;  %295 = vmatprep.mubr.msk.bf16.mxu0 %vm395_vm0, %v394_v1  ;;  %v364_v4 = vld [vmem:[%s514_s1 + $0x10] sm:$0xff]  }
   0x2   :  { %280 = vmatpush3.bf16.msra.mxu0 %v362_v0  ;;  %334 = vmatprep.subr.bf16.mxu1 %v396_v3  ;;  %v136_v5 = vld [vmem:[%s515_s2] sm:$0xff]  ;;  %v137_v6 = vld [vmem:[%s515_s2 + $0x8] sm:$0xff]  ;;  %v138_v8 = vld [vmem:[%s515_s2 + $0x10] sm:$0xff] }
   0x3   :  { %281 = vmatprep.subr.bf16.mxu0 %v394_v1  ;;  %331 = vmatprep.mubr.msk.f32.mxu1 %vm395_vm0, %v394_v1  ;;  %v335_v7 = vpack.c.bf16 %v137_v6, %v136_v5  ;;  %v139_v9 = vld [vmem:[%s515_s2 + $0x18] sm:$0xff]  ;;  %v140_v12 = vld [vmem:[%s515_s2 + $0x20] sm:$0xff]  ;;  %v141_v13 = vld [vmem:[%s515_s2 + $0x28] sm:$0xff] }
   0x4   :  { %v365_v10 = vld [vmem:[%s514_s1 + $0x18] sm:$0xff]   ;;  %v338_v11 = vpack.c.bf16 %v139_v9, %v138_v8 }
   0x5   :  { %336 = vmatpush3.bf16.msra.mxu1 %v335_v7 }
   0x6   :  { %282 = vmatpush3.bf16.msra.mxu0 %v363_v2  ;;  %337 = vmatprep.subr.bf16.mxu1 %v396_v3 }
   0x7   :  { %283 = vmatprep.subr.bf16.mxu0 %v394_v1 }
   0xa   :  { %284 = vmatpush3.bf16.msra.mxu0 %v364_v4 }
   0xb   :  { %285 = vmatprep.subr.bf16.mxu0 %v394_v1 }
   0xc   :  { %9 = vsyncpa [#allocation4], 0  ;;  %v366_v14 = vld [vmem:[%s514_s1 + $0x20] sm:$0xff]   ;;  %339 = vmatpush3.bf16.msra.mxu1 %v338_v11  ;;  %v341_v15 = vpack.c.bf16 %v141_v13, %v140_v12  ;;  %v142_v16 = vld [vmem:[%s515_s2 + $0x30] sm:$0xff]  ;;  %s397_s13 = smov [#allocation3]  }
   0xd   :  { %340 = vmatprep.subr.bf16.mxu1 %v396_v3  ;;  %v143_v17 = vld [vmem:[%s515_s2 + $0x38] sm:$0xff]  ;;  %v367_v18 = vld [vmem:[%s514_s1 + $0x28] sm:$0xff]   ;;  %v144_v20 = vld [vmem:[%s515_s2 + $0x40] sm:$0xff]  ;;  %s236_s14 = sshll.u32 %s397_s13, 4  ;;  %s237_s14 = int_to_ptr.vmem [resolvable:$true] %s236_s14 }
   0xe   :  { %286 = vmatpush3.bf16.msra.mxu0 %v365_v10  ;;  %v344_v19 = vpack.c.bf16 %v143_v17, %v142_v16  ;;  %v145_v21 = vld [vmem:[%s515_s2 + $0x48] sm:$0xff]  ;;  %v368_v22 = vld [vmem:[%s514_s1 + $0x30] sm:$0xff]   ;;  %v147_v25 = vld [vmem:[%s515_s2 + $0x58] sm:$0xff]  ;;  %p375_p1 = scmp.lt.s32.totalorder %s237_s14, %s237_s14 }
   0xf   :  { %287 = vmatprep.subr.bf16.mxu0 %v394_v1  ;;  %v347_v23 = vpack.c.bf16 %v145_v21, %v144_v20  ;;  %v146_v24 = vld [vmem:[%s515_s2 + $0x50] sm:$0xff]  ;;  %v369_v26 = vld [vmem:[%s514_s1 + $0x38] sm:$0xff]   ;;  %v148_v28 = vld [vmem:[%s515_s2 + $0x60] sm:$0xff] }
  0x10   :  { %342 = vmatpush3.bf16.msra.mxu1 %v341_v15  ;;  %v350_v27 = vpack.c.bf16 %v147_v25, %v146_v24  ;;  %v149_v29 = vld [vmem:[%s515_s2 + $0x68] sm:$0xff]  ;;  %v25_v30 = vld [vmem:[%s513_s0] sm:$0xf]  ;;  %v150_v32 = vld [vmem:[%s515_s2 + $0x70] sm:$0xff] }
  0x11   :  { %343 = vmatprep.subr.bf16.mxu1 %v396_v3  ;;  %v353_v31 = vpack.c.bf16 %v149_v29, %v148_v28  ;;  %v151_v33 = vld [vmem:[%s515_s2 + $0x78] sm:$0xff]  ;;  %v252_v39 = vld [vmem:[%s516_s3] ss:$0 sm:$0xff]  ;;  %s370_s2 = scalar_lea.vmem %s237_s14, 128 }
  0x12   :  { %288 = vmatpush3.bf16.msra.mxu0 %v366_v14  ;;  %v356_v34 = vpack.c.bf16 %v151_v33, %v150_v32  ;;  %p371_p0 = scmp.ne.s32.totalorder %s237_s14, %s370_s2  ;;  %p376_p2 = scmp.lt.s32.totalorder %s370_s2, %s370_s2 }
  0x13   :  { %289 = vmatprep.subr.bf16.mxu0 %v394_v1 }
  0x14   :  { %345 = vmatpush3.bf16.msra.mxu1 %v344_v19  ;;  %p377_p3 = por %p376_p2, %p375_p1 }
  0x15   :  { %346 = vmatprep.subr.bf16.mxu1 %v396_v3 }
  0x16   :  { %290 = vmatpush3.bf16.msra.mxu0 %v367_v18  ;;  %p378_p4 = pnand %p377_p3, %p371_p0 }
  0x17   :  { %291 = vmatprep.subr.bf16.mxu0 %v394_v1 }
  0x18   :  { %348 = vmatpush3.bf16.msra.mxu1 %v347_v23 }
  0x19   :  { %349 = vmatprep.subr.bf16.mxu1 %v396_v3 }
  0x1a   :  { %292 = vmatpush3.bf16.msra.mxu0 %v368_v22 }
  0x1b   :  { %293 = vmatprep.subr.bf16.mxu0 %v394_v1 }
  0x1c   :  { %351 = vmatpush3.bf16.msra.mxu1 %v350_v27 }
  0x1d   :  { %352 = vmatprep.subr.bf16.mxu1 %v396_v3 }
  0x1e   :  { %294 = vmatpush3.bf16.msra.mxu0 %v369_v26 }
  0x20   :  { %354 = vmatpush3.bf16.msra.mxu1 %v353_v31 }
  0x21   :  { %296 = vmatmul.mubr.bf16.vlgmr.msra.gmra.mrb[0].mxu0 %v25_v30  ;;  %355 = vmatprep.subr.bf16.mxu1 %v396_v3 }
  0x24   :  { %357 = vmatpush3.bf16.msra.mxu1 %v356_v34 }
  0xf4   :  { %v124_v35 = vpop.f32.mrb[0].mxu0 }
  0xf5   :  { %v297_v36 = vpop.f32.mrb[1].mxu0  ;;  %332 = vmatmul.mubr.f32.vlgmr.msra.gmra.mrb[0].mxu1 %v124_v35 }
  0xf6   :  { %v127_v37 = vpop.f32.mrb[2].mxu0 }
  0xf7   :  { %v298_v38 = vpop.f32.mrb[3].mxu0 }
 0x1c8   :  { %v225_v40 = vpop.f32.mrb[0].mxu1 }
 0x1c9   :  { %v226_v41 = vadd.f32 %v252_v39, %v225_v40  ;;  %v333_v42 = vpop.f32.mrb[1].mxu1 }
 0x1cb   :  { %229 = vst [vmem:[#allocation3] sm:$0xff] %v226_v41 }
 0x1cc   :  { %381 = shalt.err (!%p378_p4)
}
 0x1cd   :  { %s382_s17 = scalar_lea.hbm %s517_s4, 128 }
 0x1ce   :  { %p383_p5 = scmp.ne.s32.totalorder %s517_s4, %s382_s17  ;;  %p386_p6 = scmp.lt.u32.totalorder %s382_s17, %s517_s4 }
 0x1d0   :  { %p388_p7 = pnand %p386_p6, %p383_p5 }
 0x1d2   :  { %391 = shalt.err (!%p388_p7)
}
 0x1d3   :  { %239 = dma.vmem_to_hbm [thread:$0]  %s237_s14, 128, %s517_s4, [#allocation4]  }
 0x1d4   :  { %392 = dma.done.wait [#allocation4], 128  }
 0x1d5   :  { %393 = vsyncadd [#allocation4], 4294967168 }
 0x1d6   :  { %243 = vsyncpa [#allocation4], 1 }

</bundles_post_ra>
